<compile_context>
chip_gen: v7x
topology: tpu7x:2x2x1
jax: 0.10.0
libtpu: 0.0.40
codegen_flags: <defaults>
</compile_context>

<pallas_src>
import functools

import jax
import jax.numpy as jnp
from jax.experimental import pallas as pl
from jax.experimental.pallas import tpu as pltpu

_LANE = 128
_MAX_TILE_L = 2048  # measured mem-bound sweet spot; keeps buffers small on v7x too


def _max_identity(dtype):
    dtype = jnp.dtype(dtype)
    if jnp.issubdtype(dtype, jnp.floating):
        return -jnp.inf
    if jnp.issubdtype(dtype, jnp.integer):
        return jnp.iinfo(dtype).min
    raise ValueError(f"unsupported dtype for max pooling: {dtype}")


def _gmp_kernel(x_ref, o_ref, acc_ref, *, tile_l, fold, min_val):
    # x_ref:   (C, TILE_L)  one length-tile of one batch element (batch dim squeezed)
    # o_ref:   (1, C)       lane-dense output row; block is resident across the L axis
    # acc_ref: (C, FOLD)    running element-wise max in the native dtype (VMEM scratch)
    li = pl.program_id(1)

    @pl.when(li == 0)
    def _init():
        acc_ref[...] = jnp.full_like(acc_ref, min_val)

    x = x_ref[...]
    acc = acc_ref[...]
    # Static, unrolled fold over FOLD-wide lane chunks: element-wise max stays on the
    # 4 VALU slots; no per-step cross-lane (XLU) reduction.
    for t in range(tile_l // fold):
        acc = jnp.maximum(acc, x[:, t * fold:(t + 1) * fold])
    acc_ref[...] = acc

    @pl.when(li == pl.num_programs(1) - 1)
    def _finish():
        # One cross-lane reduce + tiny transpose per (batch) block, off the hot loop.
        col = jnp.max(acc_ref[...], axis=-1, keepdims=True)          # (C, 1)
        o_ref[...] = jnp.transpose(col).astype(o_ref.dtype)          # (1, C) lane-dense


def global_max_pool1d(x: jax.Array, *, vmem_tile_bytes: int = 2 * 1024 * 1024) -> jax.Array:
    """Equivalent of F.max_pool1d(x, kernel_size=x.shape[2]) for x of shape (N, C, L)."""
    n, c, l = x.shape
    dtype = x.dtype
    itemsize = jnp.dtype(dtype).itemsize
    min_val = _max_identity(dtype)

    if l <= _LANE:
        # Tiny length: a single full-length block, no padding needed.
        tile_l = l
        fold = l
        l_pad = l
    else:
        # TILE_L: multiple of 128, sized so (C, TILE_L) stays within a small budget
        # (double-buffered by the auto-pipeline), capped at the measured sweet spot.
        budget_l = max(_LANE, (vmem_tile_bytes // max(1, c * itemsize)) // _LANE * _LANE)
        l_ceil = ((l + _LANE - 1) // _LANE) * _LANE
        tile_l = int(min(budget_l, _MAX_TILE_L, l_ceil))
        fold = _LANE
        l_pad = ((l + tile_l - 1) // tile_l) * tile_l

    x_in = x
    if l_pad != l:
        # Pad the reduction axis with the max-identity so padding never wins the max.
        x_in = jnp.pad(x, ((0, 0), (0, 0), (0, l_pad - l)), constant_values=min_val)

    num_l = l_pad // tile_l
    kernel = functools.partial(_gmp_kernel, tile_l=tile_l, fold=fold, min_val=min_val)

    out = pl.pallas_call(
        kernel,
        out_shape=jax.ShapeDtypeStruct((n, 1, c), dtype),
        grid_spec=pltpu.PrefetchScalarGridSpec(
            num_scalar_prefetch=0,
            grid=(n, num_l),
            in_specs=[
                pl.BlockSpec((pl.Squeezed(), c, tile_l), lambda i, li: (i, 0, li)),
            ],
            # Same output block for every L step -> output stays resident in VMEM
            # across the reduction axis; written once at the final step.
            out_specs=pl.BlockSpec((pl.Squeezed(), 1, c), lambda i, li: (i, 0, 0)),
            scratch_shapes=[pltpu.VMEM((c, fold), dtype)],
        ),
        compiler_params=pltpu.CompilerParams(
            dimension_semantics=("parallel", "arbitrary"),
        ),
    )(x_in)

    # (N, 1, C) lane-dense kernel output -> (N, C, 1) to match F.max_pool1d.
    return out.reshape(n, c)[:, :, None]


if __name__ == "__main__":
    key = jax.random.PRNGKey(0)
    k1, k2 = jax.random.split(key)

    # Small shape consistent with the module: (batch=2, channels=4, length=16).
    x_small = jax.random.normal(k1, (2, 4, 16), dtype=jnp.float32)
    out_small = jax.block_until_ready(global_max_pool1d(x_small))
    ref_small = jnp.max(x_small, axis=2, keepdims=True)
    assert out_small.shape == (2, 4, 1), out_small.shape
    assert jnp.allclose(out_small, ref_small), "mismatch vs reference (small path)"

    # Also exercise the tiled reduction path (multiple L steps + identity padding).
    x_big = jax.random.normal(k2, (2, 8, 4500), dtype=jnp.float32)
    out_big = jax.block_until_ready(global_max_pool1d(x_big))
    ref_big = jnp.max(x_big, axis=2, keepdims=True)
    assert out_big.shape == (2, 8, 1), out_big.shape
    assert jnp.allclose(out_big, ref_big), "mismatch vs reference (tiled path)"

    print("KERNEL_OK")
</pallas_src>

<mosaic_0001>
module attributes {stable_mosaic.version = 11 : i64} {
  func.func @_gmp_kernel(%arg0: i32, %arg1: i32, %arg2: memref<1x4x16xf32, #tpu.memory_space<vmem>>, %arg3: memref<1x1x4xf32, #tpu.memory_space<vmem>>, %arg4: memref<4x16xf32, #tpu.memory_space<vmem>>) attributes {dimension_semantics = [#tpu.dimension_semantics<parallel>, #tpu.dimension_semantics<arbitrary>], iteration_bounds = array<i64: 2, 1>, scalar_prefetch = 0 : i64, scratch_operands = 1 : i64, tpu.core_type = #tpu.core_type<tc>, window_params = [{transform_indices = @transform_0, window_bounds = array<i64: 1, 4, 16>}, {transform_indices = @transform_1, window_bounds = array<i64: 1, 1, 4>}]} {
    %c0_i32 = arith.constant 0 : i32
    %0 = arith.cmpi eq, %arg1, %c0_i32 : i32
    %1 = arith.extui %0 : i1 to i32
    %c0_i32_0 = arith.constant 0 : i32
    %2 = arith.cmpi ne, %1, %c0_i32_0 : i32
    scf.if %2 {
      %cst = arith.constant 0xFF800000 : f32
      %11 = vector.broadcast %cst : f32 to vector<4x16xf32>
      %c0_9 = arith.constant 0 : index
      %c0_10 = arith.constant 0 : index
      %12 = vector.load %arg4[%c0_9, %c0_10] : memref<4x16xf32, #tpu.memory_space<vmem>>, vector<4x16xf32>
      tpu.vector_store %arg4[%c0_9, %c0_10], %11 {strides = array<i32>} : memref<4x16xf32, #tpu.memory_space<vmem>>, vector<4x16xf32>,
    } else {
    }
    %c0 = arith.constant 0 : index
    %c0_1 = arith.constant 0 : index
    %c0_2 = arith.constant 0 : index
    %3 = vector.load %arg2[%c0, %c0_1, %c0_2] : memref<1x4x16xf32, #tpu.memory_space<vmem>>, vector<1x4x16xf32>
    %4 = vector.shape_cast %3 : vector<1x4x16xf32> to vector<4x16xf32>
    %c0_3 = arith.constant 0 : index
    %c0_4 = arith.constant 0 : index
    %5 = vector.load %arg4[%c0_3, %c0_4] : memref<4x16xf32, #tpu.memory_space<vmem>>, vector<4x16xf32>
    %6 = arith.maximumf %5, %4 : vector<4x16xf32>
    %c0_5 = arith.constant 0 : index
    %c0_6 = arith.constant 0 : index
    %7 = vector.load %arg4[%c0_5, %c0_6] : memref<4x16xf32, #tpu.memory_space<vmem>>, vector<4x16xf32>
    tpu.vector_store %arg4[%c0_5, %c0_6], %6 {strides = array<i32>} : memref<4x16xf32, #tpu.memory_space<vmem>>, vector<4x16xf32>,
    %c0_i32_7 = arith.constant 0 : i32
    %8 = arith.cmpi eq, %arg1, %c0_i32_7 : i32
    %9 = arith.extui %8 : i1 to i32
    %c0_i32_8 = arith.constant 0 : i32
    %10 = arith.cmpi ne, %9, %c0_i32_8 : i32
    scf.if %10 {
      %c0_9 = arith.constant 0 : index
      %c0_10 = arith.constant 0 : index
      %11 = vector.load %arg4[%c0_9, %c0_10] : memref<4x16xf32, #tpu.memory_space<vmem>>, vector<4x16xf32>
      %cst = arith.constant dense<0xFF800000> : vector<4xf32>
      %12 = vector.multi_reduction <maximumf>, %11, %cst [1] : vector<4x16xf32> to vector<4xf32>
      %13 = vector.shape_cast %12 : vector<4xf32> to vector<4x1xf32>
      %14 = tpu.transpose %13, [1, 0] : vector<4x1xf32> -> vector<1x4xf32>
      %c0_11 = arith.constant 0 : index
      %c0_12 = arith.constant 0 : index
      %c0_13 = arith.constant 0 : index
      %15 = vector.load %arg3[%c0_11, %c0_12, %c0_13] : memref<1x1x4xf32, #tpu.memory_space<vmem>>, vector<1x1x4xf32>
      %16 = vector.shape_cast %15 : vector<1x1x4xf32> to vector<1x4xf32>
      %17 = vector.shape_cast %14 : vector<1x4xf32> to vector<1x1x4xf32>
      tpu.vector_store %arg3[%c0_11, %c0_12, %c0_13], %17 {strides = array<i32>} : memref<1x1x4xf32, #tpu.memory_space<vmem>>, vector<1x1x4xf32>,
    } else {
    }
    return
  }
  func.func @transform_0(%arg0: i32, %arg1: i32) -> (i32, i32, i32) {
    %c0_i32 = arith.constant 0 : i32
    %c0_i32_0 = arith.constant 0 : i32
    return %arg0, %c0_i32, %arg1 : i32, i32, i32
  }
  func.func @transform_1(%arg0: i32, %arg1: i32) -> (i32, i32, i32) {
    %c0_i32 = arith.constant 0 : i32
    %c0_i32_0 = arith.constant 0 : i32
    %c0_i32_1 = arith.constant 0 : i32
    return %arg0, %c0_i32, %c0_i32_0 : i32, i32, i32
  }
}

</mosaic_0001>

<bundles_post_ra>
// kernel: tpu_custom_call.1
= control target key start
LH: loop header
LB: loop body
LE: loop exit
PB: predicated region body
PF: predicated region fallthrough
CT: control target
= control target key end

     0   :  { %6 = vsyncpa [#allocation4], 0  ;;  %s661_s0 = inlined_call_operand.hbm [shape: f32[2,4,16], index: 0, kind: input, shape index: {}]   ;;  %s662_s1 = inlined_call_operand.hbm [shape: f32[2,1,4], index: 1, kind: output, shape index: {}]  }
   0x1   :  { %8 = vsyncpa [#allocation4 + $0x1], 0 }
   0x2   :  { %9 = vsyncpa [#allocation5], 0 }
   0x3   :  { %11 = vsyncpa [#allocation5 + $0x1], 0  ;;  %s488_s6 = smov 0   ;;  %s490_s7 = smov 0  }
   0x4   :  { %s492_s8 = smov 0   ;;  %s494_s9 = smov 0  }
   0x5   :  { %s496_s10 = smov 0   ;;  %s498_s11 = smov 0  }
   0x6 LB: > { %s286_s12 = sadd.s32 4294967295, %s473_s11   ;;  %s287_s13 = sadd.s32 4294967294, %s473_s11   ;;  %s473_s11 = sphi %s498_s11, %s17_s11   ;;  %s469_s10 = sphi %s496_s10, %s678_s10   ;;  %s465_s9 = sphi %s494_s9, %s677_s9   ;;  %s461_s8 = sphi %s492_s8, %s676_s8   ;;  %s457_s7 = sphi %s490_s7, %s675_s7   ;;  %s453_s6 = sphi %s488_s6, %s674_s6  }
   0x7   : > { %s29_s14 = sadd.s32 1, %s469_s10  ;;  %s38_s15 = sadd.s32 1, %s461_s8 }
   0x8   : > { %p31_p0 = scmp.ge.s32.totalorder %s29_s14, 2  ;;  %p45_p1 = scmp.ne.s32.totalorder %s461_s8, %s457_s7 }
   0x9   : > { %p46_p2 = scmp.eq.s32.totalorder %s473_s11, 0  ;;  %p51_p3 = scmp.ne.s32.totalorder %s457_s7, %s453_s6 }
   0xa   : > { %s680_s14 = smov (%p31_p0, %s29_s14), 0  ;;  %p52_p5 = scmp.eq.s32.totalorder %s286_s12, 0 }
   0xb   : > { %p529_p4 = por %p46_p2, %p45_p1  ;;  %s33_s17 = ssub.s32 %s469_s10, %s680_s14 }
   0xc   : > { %p75_p6 = scmp.eq.s32.totalorder %s286_s12, 1  ;;  %p36_p7 = scmp.eq.s32.totalorder %s33_s17, 0 }
   0xd   : > { %p535_p8 = por %p52_p5, %p51_p3  ;;  %p81_p10 = scmp.eq.s32.totalorder %s287_s13, 1 }
   0xe   : > { %p539_p9 = por %p75_p6, %p45_p1  ;;  %p309_p13 = scmp.lt.s32.totalorder %s473_s11, 2 }
   0xf   : > { %s544_s20 = scalar_select %p36_p7, %s461_s8, %s38_s15  }
  0x10   : > { %s666_s19 = scalar_select %p539_p9, 1, 0 }
  0x11   : > { %p546_p11 = por %p81_p10, %p51_p3  ;;  %s101_s22 = sand.u32 1, %s461_s8  }
  0x12   : > { %s290_s23 = sshll.u32 %s101_s22, 2  ;;  %s291_s24 = sshll.u32 %s469_s10, 6 }
  0x13   : > { %s667_s21 = scalar_select %p546_p11, 1, 0 }
  0x14   : > { %s557_s27 = scalar_lea.hbm %s661_s0, %s291_s24  ;;  %s105_s28 = scalar_lea.vmem [#allocation3], %s290_s23 }
  0x15   : > { %s113_s29 = sshll.u32 %s105_s28, 4  ;;  %p563_p0 = pnand %p309_p13, %p529_p4  ;;  %s559_s29 = int_to_ptr.vmem [resolvable:$true] %s113_s29 }
  0x16   : > { %s102_s2 = scalar_lea.sflag [#allocation4], %s101_s22  ;;  %s361_s3 = scalar_lea.hbm %s557_s27, 64 }
  0x17   : > { %p362_p3 = scmp.ne.s32.totalorder %s557_s27, %s361_s3  ;;  %p363_p5 = pneg %p563_p0 }
  0x18   : > { %s366_s12 = scalar_lea.hbm %s661_s0, 128  ;;  %p367_p4 = scmp.lt.u32.totalorder %s557_s27, %s661_s0 }
  0x19   : > { %p364_p6 = pnand %p363_p5, %p362_p3  ;;  %p368_p10 = scmp.lt.u32.totalorder %s366_s12, %s361_s3 }
  0x1a   : > { %p370_p12 = scmp.lt.u32.totalorder %s361_s3, %s557_s27 }
  0x1b   : > { %p365_p7 = pneg %p364_p6  ;;  %p369_p13 = por %p368_p10, %p367_p4 }
  0x1d   : > { %p371_p1 = por %p370_p12, %p369_p13 }
  0x1f   : > { %p372_p2 = pnand %p371_p1, %p365_p7 }
  0x21   : > { %375 = shalt.err (!%p372_p2)
}
  0x22   : > { %s376_s16 = scalar_lea.vmem %s559_s29, 64  ;;  %s475_s17 = smov [#allocation3]  }
  0x23   : > { %p377_p3 = scmp.ne.s32.totalorder %s559_s29, %s376_s16  ;;  %s381_s22 = sshll.u32 %s475_s17, 4  ;;  %s382_s22 = int_to_ptr.vmem [resolvable:$false] %s381_s22 }
  0x24   : > { %s383_s23 = scalar_lea.vmem %s382_s22, 128  ;;  %p384_p9 = scmp.lt.s32.totalorder %s559_s29, %s382_s22 }
  0x25   : > { %p379_p6 = pnand %p377_p3, %p363_p5  ;;  %p385_p4 = scmp.lt.s32.totalorder %s383_s23, %s376_s16 }
  0x27   : > { %p380_p11 = pneg %p379_p6  ;;  %p386_p10 = por %p385_p4, %p384_p9 }
  0x29   : > { %p387_p12 = pnand %p386_p10, %p380_p11 }
  0x2b   : > { %390 = shalt.err (!%p387_p12)
}
  0x2c   : > { %304 = dma.hbm_to_vmem [thread:$0]  (!%p563_p0), %s557_s27, 64, %s559_s29, %s102_s2  }
  0x2d   : > { %p669_p1 = scmp.lt.s32.totalorder %s473_s11, 3  ;;  %p670_p2 = scmp.ge.s32.totalorder %s473_s11, 1 }
  0x2f   : > { %p119_p5 = pnand %p670_p2, %p669_p1 }
  0x30   : > { %s599_s24 = sand.u32 (!%p119_p5), 1, %s457_s7  }
  0x31   : > { %122 = sbr.rel (%p119_p5) target bundleno = 362 (0x16a), region = 24  ;;  %s293_s25 = sshll.u32 (!%p119_p5), %s599_s24, 2 }
  0x32   : > { %s125_s26 = scalar_lea.sflag (!%p119_p5), [#allocation4], %s599_s24  ;;  %s128_s28 = scalar_lea.vmem (!%p119_p5), [#allocation3], %s293_s25 }
  0x38   : > { %444 = dma.done.wait (%p535_p8), %s125_s26, 64  }
  0x39   : > { %446 = vsyncadd (%p535_p8), %s125_s26, 4294967232  ;;  %vm150_vm0 = vcmask 125952   ;;  %v476_v0 = vmov -inf   ;;  %v152_v1 = vld [vmem:[%s128_s28] sm:$0xf]  ;;  %s294_s27 = sshll.u32 %s465_s9, 4 }
  0x3a   : > { %151 = vst.msk [vmem:[#allocation2] sm:$0xf] %vm150_vm0, %v476_v0  ;;  %s145_s29 = scalar_lea.vmem [#allocation6], %s599_s24  ;;  %vm196_vm1 = vcmask 24576   ;;  %s612_s3 = scalar_lea.hbm %s662_s1, %s294_s27 }
  0x3b   : > { %s211_s18 = sshll.u32 %s145_s29, 4  ;;  %s199_s4 = scalar_lea.sflag [#allocation5], %s599_s24  ;;  %s614_s18 = int_to_ptr.vmem [resolvable:$true] %s211_s18 }
  0x3c   : > { %s391_s5 = scalar_lea.vmem %s614_s18, 16  ;;  %p671_p9 = scmp.ne.s32.totalorder %s666_s19, 0 }
  0x3d   : > { %p392_p8 = scmp.ne.s32.totalorder %s614_s18, %s391_s5  ;;  %s477_s9 = smov [#allocation6]  }
  0x3e   : > { %s395_s12 = sshll.u32 %s477_s9, 4  ;;  %s396_s12 = int_to_ptr.vmem [resolvable:$false] %s395_s12 }
  0x3f   : > { %p393_p11 = pnand %p392_p8, %p671_p9  ;;  %s397_s13 = scalar_lea.vmem %s396_s12, 32 }
  0x40   : > { %p398_p7 = scmp.lt.s32.totalorder %s614_s18, %s396_s12  ;;  %p399_p13 = scmp.lt.s32.totalorder %s397_s13, %s391_s5 }
  0x41   : > { %v153_v2 = vld [vmem:[#allocation2] sm:$0xf]  ;;  %p394_p0 = pneg %p393_p11 }
  0x42   : > { %v154_v3 = vmax.f32 %v153_v2, %v152_v1  ;;  %p400_p3 = por %p399_p13, %p398_p7 }
  0x44   : > { %156 = vst.msk [vmem:[#allocation2] sm:$0xf] %vm150_vm0, %v154_v3  ;;  %p401_p6 = pnand %p400_p3, %p394_p0 }
  0x4b   : > { %v160_v4 = vld [vmem:[#allocation2] sm:$0xf] }
  0x4c   : > { %v161_v5 = vsel %vm150_vm0, %v160_v4, -inf }
  0x4d   : > { %162 = vmax.xlane.f32.xlu0 %v161_v5 }
  0xda   : > { %v163_v6 = vpop.xlane.xlu0 %162 }
  0xdb   : > { %164 = vxpose.xlu0.b32.start.end [1/1] (short) (narrow) %v163_v6, 8 }
 0x15b   : > { %v180_v7 = vpop.trf.xlu0 }
 0x15c   : > { %197 = vst.msk [vmem:[%s145_s29] sm:$0x1] %vm196_vm1, %v180_v7 }
 0x15d   : > { %404 = shalt.err (!%p401_p6)
}
 0x15e   : > { %s405_s15 = scalar_lea.hbm %s612_s3, 16  ;;  %s409_s22 = scalar_lea.hbm %s662_s1, 32 }
 0x15f   : > { %p406_p4 = scmp.ne.s32.totalorder %s612_s3, %s405_s15  ;;  %p410_p1 = scmp.lt.u32.totalorder %s612_s3, %s662_s1 }
 0x160   : > { %p411_p2 = scmp.lt.u32.totalorder %s409_s22, %s405_s15  ;;  %p413_p8 = scmp.lt.u32.totalorder %s405_s15, %s612_s3 }
 0x161   : > { %p407_p10 = pnand %p406_p4, %p671_p9 }
 0x162   : > { %p412_p5 = por %p411_p2, %p410_p1 }
 0x163   : > { %p408_p12 = pneg %p407_p10 }
 0x164   : > { %p414_p11 = por %p413_p8, %p412_p5 }
 0x166   : > { %p415_p0 = pnand %p414_p11, %p408_p12 }
 0x168   : > { %418 = shalt.err (!%p415_p0)
}
 0x169   : > { %299 = dma.vmem_to_hbm [thread:$0]  (%p671_p9), %s614_s18, 16, %s612_s3, %s199_s4  }
 0x16a PF: > { %s223_s25 = sand.u32 1, %s453_s6   ;;  %p672_p7 = scmp.ne.s32.totalorder %s667_s21, 0 }
 0x16b   : > { %p673_p13 = scmp.ge.s32.totalorder %s473_s11, 2  ;;  %s224_s26 = scalar_lea.sflag [#allocation5], %s223_s25 }
 0x16d   : > { %p306_p3 = pnand %p673_p13, %p672_p7 }
 0x16f   : > { %448 = dma.done.wait (!%p306_p3), %s224_s26, 16  }
 0x170   : > { %450 = vsyncadd (!%p306_p3), %s224_s26, 4294967280  ;;  %s17_s11 = sadd.s32 1, %s473_s11   ;;  %s674_s6 = smov %s457_s7 }
 0x171   : > { %p14_p6 = scmp.ge.s32.totalorder %s17_s11, 4   ;;  %s675_s7 = smov %s461_s8 }
 0x172   : > { %s676_s8 = smov %s544_s20  ;;  %s677_s9 = smov %s469_s10 }
 0x173   : > { %s678_s10 = smov %s680_s14  ;;  %16 = sbr.rel (!%p14_p6) target bundleno = 6 (0x6), region = 77 }
 0x17a   :  { %228 = vsyncpa [#allocation4], 1 }
 0x17b   :  { %230 = vsyncpa [#allocation4 + $0x1], 1 }
 0x17c   :  { %231 = vsyncpa [#allocation5], 1 }
 0x17d   :  { %233 = vsyncpa [#allocation5 + $0x1], 1 }

</bundles_post_ra>
